<compile_context>
chip_gen: v7x
topology: tpu7x:2x2x1
jax: 0.10.0
libtpu: 0.0.40
codegen_flags: <defaults>
</compile_context>

<pallas_src>
import functools

import jax
import jax.numpy as jnp
from jax.experimental import pallas as pl
from jax.experimental.pallas import tpu as pltpu


# ----------------------------- Pallas kernels --------------------------------
def _accumulate(adj_ref, h_ref, acc_ref, block_k):
    """One grid step of the tiled aggregation: acc += Adj[i, k] @ H[k]."""
    k = pl.program_id(1)

    @pl.when(k == 0)
    def _():
        acc_ref[...] = jnp.zeros_like(acc_ref)

    row0 = pl.multiple_of(k * block_k, block_k)
    h_blk = h_ref[pl.ds(row0, block_k), :]          # slice of the VMEM-resident H
    acc_ref[...] += jnp.dot(adj_ref[...], h_blk,
                            preferred_element_type=jnp.float32)


def _is_last_k():
    return pl.program_id(1) == pl.num_programs(1) - 1


def _layer1_kernel(adj_ref, x_ref, w1_ref, b1_ref, w2_ref, out_ref, acc_ref, *, block_k):
    # acc = (Adj @ X) row block, f32, width F_in (cheap order: F_in < 64)
    _accumulate(adj_ref, x_ref, acc_ref, block_k)

    @pl.when(_is_last_k())
    def _():
        h1 = jnp.dot(acc_ref[...], w1_ref[...], preferred_element_type=jnp.float32)
        h1 = jnp.maximum(h1 + b1_ref[...], 0.0)      # ReLU in f32
        # Pre-project for layer 2 (P2 = H1 @ W2, width 8) so layer 2 aggregates narrow.
        out_ref[...] = jnp.dot(h1, w2_ref[...],
                               preferred_element_type=jnp.float32).astype(out_ref.dtype)


def _layer2_kernel(adj_ref, p_ref, b2_ref, out_ref, acc_ref, *, block_k):
    # acc = (Adj @ P2) row block, f32, width 8
    _accumulate(adj_ref, p_ref, acc_ref, block_k)

    @pl.when(_is_last_k())
    def _():
        out_ref[...] = jnp.maximum(acc_ref[...] + b2_ref[...], 0.0).astype(out_ref.dtype)


def _layer3_kernel(adj_ref, h_ref, w3_ref, b3_ref, out_ref, acc_ref, *, block_k):
    # acc = (Adj @ H2) row block, f32, width 8; project with lane-padded W3/b3.
    _accumulate(adj_ref, h_ref, acc_ref, block_k)

    @pl.when(_is_last_k())
    def _():
        logits = jnp.dot(acc_ref[...], w3_ref[...],
                         preferred_element_type=jnp.float32) + b3_ref[...]
        # log_softmax in f32; padded classes carry bias -1e30 -> exp underflows to 0.
        m = jnp.max(logits, axis=-1, keepdims=True)
        shifted = logits - m
        lse = jnp.log(jnp.sum(jnp.exp(shifted), axis=-1, keepdims=True))
        out_ref[...] = shifted - lse


# ------------------------------- wrapper --------------------------------------
def _round_up(a, b):
    return (a + b - 1) // b * b


def net_amazon_gcn_forward(x, edge_index, params, *, block_size=512):
    """x: (N, F) f32, edge_index: (2, E) int32, params: dict of W/b (f32)."""
    n, f_in = x.shape
    num_classes = params["w3"].shape[1]
    hidden2 = params["w2"].shape[1]                         # 8

    # -------- plain-JAX glue: symmetrically normalized dense adjacency --------
    # TODO(synk): for Amazon-scale graphs replace this O(N^2) dense scatter build
    # (and the dense aggregation) with a sparse segment-sum / scalar-prefetch
    # formulation; the dense form is kept for this small self-contained demo.
    src, dst = edge_index[0], edge_index[1]
    adj = jnp.zeros((n, n), jnp.float32)
    adj = adj.at[src, dst].set(1.0)
    adj = adj.at[dst, src].set(1.0)                         # undirected
    # self loops: max with eye (idempotent even if edge_index already has them)
    adj = jnp.maximum(adj, jnp.eye(n, dtype=jnp.float32))
    dinv = jax.lax.rsqrt(jnp.sum(adj, axis=1))
    norm_adj = adj * dinv[:, None] * dinv[None, :]

    # -------------------------- tiling / padding ------------------------------
    block_size = _round_up(block_size, 128)
    tile = block_size if n >= block_size else _round_up(n, 128)
    n_pad = _round_up(n, tile)
    grid = (n_pad // tile, n_pad // tile)                   # (row blocks, k blocks)

    # bf16 operands for the MXU aggregation (f32 accumulation inside the kernel).
    adj_b = jnp.zeros((n_pad, n_pad), jnp.bfloat16).at[:n, :n].set(
        norm_adj.astype(jnp.bfloat16))
    x_b = jnp.zeros((n_pad, f_in), jnp.bfloat16).at[:n, :].set(
        x.astype(jnp.bfloat16))

    # Lane-dense final projection: pad classes to a multiple of 128; padded logits
    # get bias -1e30 so the in-kernel log_softmax ignores them.
    c_pad = max(128, _round_up(num_classes, 128))
    w3p = jnp.zeros((hidden2, c_pad), jnp.float32).at[:, :num_classes].set(params["w3"])
    b3p = jnp.full((1, c_pad), -1e30, jnp.float32).at[:, :num_classes].set(params["b3"])

    compiler_params = pltpu.CompilerParams(
        dimension_semantics=("parallel", "arbitrary"),
        vmem_limit_bytes=48 * 1024 * 1024,
    )

    def call_layer(kernel, operand, resident, acc_w, out_w, out_dtype):
        f_w = operand.shape[1]
        in_specs = [
            # Adj tile: the only large streamed operand (double-buffered by Pallas).
            pl.BlockSpec((tile, tile), lambda i, k: (i, k)),
            # Aggregated operand: small, kept fully VMEM-resident (constant index map).
            pl.BlockSpec((n_pad, f_w), lambda i, k: (0, 0)),
        ] + [pl.BlockSpec(r.shape, lambda i, k: (0, 0)) for r in resident]
        return pl.pallas_call(
            functools.partial(kernel, block_k=tile),
            out_shape=jax.ShapeDtypeStruct((n_pad, out_w), out_dtype),
            grid_spec=pltpu.PrefetchScalarGridSpec(
                num_scalar_prefetch=0,
                grid=grid,
                in_specs=in_specs,
                out_specs=pl.BlockSpec((tile, out_w), lambda i, k: (i, 0)),
                scratch_shapes=[pltpu.VMEM((tile, acc_w), jnp.float32)],
            ),
            compiler_params=compiler_params,
        )(adj_b, operand, *resident)

    # layer 1: H1 = relu((Adj @ X) @ W1 + b1);  output P2 = H1 @ W2  (bf16, width 8)
    p2 = call_layer(_layer1_kernel, x_b,
                    [params["w1"], params["b1"], params["w2"]],
                    acc_w=f_in, out_w=hidden2, out_dtype=jnp.bfloat16)
    # layer 2: H2 = relu(Adj @ P2 + b2)                       (bf16, width 8)
    h2 = call_layer(_layer2_kernel, p2, [params["b2"]],
                    acc_w=hidden2, out_w=hidden2, out_dtype=jnp.bfloat16)
    # layer 3: log_softmax((Adj @ H2) @ W3 + b3)              (f32, lane-dense 128)
    logp = call_layer(_layer3_kernel, h2, [w3p, b3p],
                      acc_w=hidden2, out_w=c_pad, out_dtype=jnp.float32)

    return logp[:n, :num_classes]


# --------------------------- params / reference --------------------------------
def init_params(key, num_node_features, num_classes):
    """Deterministic Glorot-uniform weights, zero biases (shapes from __init__)."""
    dims = [(num_node_features, 64), (64, 8), (8, num_classes)]
    params = {}
    for i, (fin, fout) in enumerate(dims, start=1):
        key, sub = jax.random.split(key)
        limit = (6.0 / (fin + fout)) ** 0.5
        params[f"w{i}"] = jax.random.uniform(
            sub, (fin, fout), jnp.float32, minval=-limit, maxval=limit)
        params[f"b{i}"] = jnp.zeros((1, fout), jnp.float32)
    return params


def reference_forward(x, edge_index, params):
    """Plain-JAX f32 reference with identical semantics (for correctness check)."""
    n = x.shape[0]
    src, dst = edge_index[0], edge_index[1]
    adj = jnp.zeros((n, n), jnp.float32)
    adj = adj.at[src, dst].set(1.0)
    adj = adj.at[dst, src].set(1.0)
    adj = jnp.maximum(adj, jnp.eye(n, dtype=jnp.float32))
    dinv = jax.lax.rsqrt(jnp.sum(adj, axis=1))
    a = adj * dinv[:, None] * dinv[None, :]
    h = jnp.maximum(a @ (x @ params["w1"]) + params["b1"], 0.0)
    h = jnp.maximum(a @ (h @ params["w2"]) + params["b2"], 0.0)
    h = a @ (h @ params["w3"]) + params["b3"]
    return jax.nn.log_softmax(h, axis=1)


# ----------------------------------- demo --------------------------------------
if __name__ == "__main__":
    key = jax.random.PRNGKey(0)

    num_nodes = 256
    num_node_features = 16
    num_classes = 8
    num_edges = 1024

    k_x, k_e0, k_e1, k_p = jax.random.split(key, 4)
    x = jax.random.normal(k_x, (num_nodes, num_node_features), jnp.float32)
    edge_index = jnp.stack([
        jax.random.randint(k_e0, (num_edges,), 0, num_nodes, jnp.int32),
        jax.random.randint(k_e1, (num_edges,), 0, num_nodes, jnp.int32),
    ], axis=0)

    params = init_params(k_p, num_node_features, num_classes)

    # block_size=128 so the demo exercises a real (2, 2) grid (rows x reduction).
    out = net_amazon_gcn_forward(x, edge_index, params, block_size=128)
    out = jax.block_until_ready(out)

    assert out.shape == (num_nodes, num_classes)
    # rows of log_softmax must exp-sum to 1
    assert bool(jnp.allclose(jnp.sum(jnp.exp(out), axis=1), 1.0, atol=1e-3))
    # match the f32 plain-JAX reference (loose tol: Adj/operands fed to MXU in bf16)
    ref = reference_forward(x, edge_index, params)
    max_err = float(jnp.max(jnp.abs(out - ref)))
    assert max_err < 0.1, f"max |out - ref| = {max_err}"
    print("KERNEL_OK")
</pallas_src>

<mosaic_0001>
module attributes {stable_mosaic.version = 11 : i64} {
  func.func @_layer1_kernel(%arg0: i32, %arg1: i32, %arg2: memref<128x128xbf16, #tpu.memory_space<vmem>>, %arg3: memref<256x16xbf16, #tpu.memory_space<vmem>>, %arg4: memref<16x64xf32, #tpu.memory_space<vmem>>, %arg5: memref<1x64xf32, #tpu.memory_space<vmem>>, %arg6: memref<64x8xf32, #tpu.memory_space<vmem>>, %arg7: memref<128x8xbf16, #tpu.memory_space<vmem>>, %arg8: memref<128x16xf32, #tpu.memory_space<vmem>>) attributes {dimension_semantics = [#tpu.dimension_semantics<parallel>, #tpu.dimension_semantics<arbitrary>], iteration_bounds = array<i64: 2, 2>, scalar_prefetch = 0 : i64, scratch_operands = 1 : i64, tpu.core_type = #tpu.core_type<tc>, window_params = [{transform_indices = @transform_0, window_bounds = array<i64: 128, 128>}, {pipeline_mode = #tpu.pipeline_mode<synchronous>, transform_indices = @transform_1, window_bounds = array<i64: 256, 16>}, {pipeline_mode = #tpu.pipeline_mode<synchronous>, transform_indices = @transform_2, window_bounds = array<i64: 16, 64>}, {pipeline_mode = #tpu.pipeline_mode<synchronous>, transform_indices = @transform_3, window_bounds = array<i64: 1, 64>}, {pipeline_mode = #tpu.pipeline_mode<synchronous>, transform_indices = @transform_4, window_bounds = array<i64: 64, 8>}, {transform_indices = @transform_5, window_bounds = array<i64: 128, 8>}]} {
    %c0_i32 = arith.constant 0 : i32
    %0 = arith.cmpi eq, %arg1, %c0_i32 : i32
    %1 = arith.extui %0 : i1 to i32
    %c0_i32_0 = arith.constant 0 : i32
    %2 = arith.cmpi ne, %1, %c0_i32_0 : i32
    scf.if %2 {
      %cst_8 = arith.constant 0.000000e+00 : f32
      %15 = vector.broadcast %cst_8 : f32 to vector<128x16xf32>
      %c0_9 = arith.constant 0 : index
      %c0_10 = arith.constant 0 : index
      %16 = vector.load %arg8[%c0_9, %c0_10] : memref<128x16xf32, #tpu.memory_space<vmem>>, vector<128x16xf32>
      tpu.vector_store %arg8[%c0_9, %c0_10], %15 {strides = array<i32>} : memref<128x16xf32, #tpu.memory_space<vmem>>, vector<128x16xf32>,
    } else {
    }
    %c128_i32 = arith.constant 128 : i32
    %3 = arith.muli %arg1, %c128_i32 : i32
    %4 = tpu.assume_multiple %3, 128 : i32
    %5 = arith.index_cast %4 : i32 to index
    %c0 = arith.constant 0 : index
    %6 = vector.load %arg3[%5, %c0] : memref<256x16xbf16, #tpu.memory_space<vmem>>, vector<128x16xbf16>
    %c0_1 = arith.constant 0 : index
    %c0_2 = arith.constant 0 : index
    %7 = vector.load %arg8[%c0_1, %c0_2] : memref<128x16xf32, #tpu.memory_space<vmem>>, vector<128x16xf32>
    %c0_3 = arith.constant 0 : index
    %c0_4 = arith.constant 0 : index
    %8 = vector.load %arg2[%c0_3, %c0_4] : memref<128x128xbf16, #tpu.memory_space<vmem>>, vector<128x128xbf16>
    %cst = arith.constant dense<0.000000e+00> : vector<128x16xf32>
    %9 = tpu.matmul %8, %6, %cst {dimension_numbers = #tpu.dot_dimension_numbers<[1], [0], [0], [1], [0, 0, 1, 1], [], []>} : vector<128x128xbf16>, vector<128x16xbf16>, vector<128x16xf32> -> vector<128x16xf32>
    %10 = arith.addf %7, %9 : vector<128x16xf32>
    %c0_5 = arith.constant 0 : index
    %c0_6 = arith.constant 0 : index
    %11 = vector.load %arg8[%c0_5, %c0_6] : memref<128x16xf32, #tpu.memory_space<vmem>>, vector<128x16xf32>
    tpu.vector_store %arg8[%c0_5, %c0_6], %10 {strides = array<i32>} : memref<128x16xf32, #tpu.memory_space<vmem>>, vector<128x16xf32>,
    %c1_i32 = arith.constant 1 : i32
    %12 = arith.cmpi eq, %arg1, %c1_i32 : i32
    %13 = arith.extui %12 : i1 to i32
    %c0_i32_7 = arith.constant 0 : i32
    %14 = arith.cmpi ne, %13, %c0_i32_7 : i32
    scf.if %14 {
      %c0_8 = arith.constant 0 : index
      %c0_9 = arith.constant 0 : index
      %15 = vector.load %arg8[%c0_8, %c0_9] : memref<128x16xf32, #tpu.memory_space<vmem>>, vector<128x16xf32>
      %c0_10 = arith.constant 0 : index
      %c0_11 = arith.constant 0 : index
      %16 = vector.load %arg4[%c0_10, %c0_11] : memref<16x64xf32, #tpu.memory_space<vmem>>, vector<16x64xf32>
      %cst_12 = arith.constant dense<0.000000e+00> : vector<128x64xf32>
      %17 = tpu.matmul %15, %16, %cst_12 {dimension_numbers = #tpu.dot_dimension_numbers<[1], [0], [0], [1], [0, 0, 1, 1], [], []>} : vector<128x16xf32>, vector<16x64xf32>, vector<128x64xf32> -> vector<128x64xf32>
      %c0_13 = arith.constant 0 : index
      %c0_14 = arith.constant 0 : index
      %18 = vector.load %arg5[%c0_13, %c0_14] : memref<1x64xf32, #tpu.memory_space<vmem>>, vector<1x64xf32>
      %19 = vector.broadcast %18 : vector<1x64xf32> to vector<128x64xf32>
      %20 = arith.addf %17, %19 : vector<128x64xf32>
      %cst_15 = arith.constant 0.000000e+00 : f32
      %21 = vector.broadcast %cst_15 : f32 to vector<128x64xf32>
      %22 = arith.maximumf %20, %21 : vector<128x64xf32>
      %c0_16 = arith.constant 0 : index
      %c0_17 = arith.constant 0 : index
      %23 = vector.load %arg6[%c0_16, %c0_17] : memref<64x8xf32, #tpu.memory_space<vmem>>, vector<64x8xf32>
      %cst_18 = arith.constant dense<0.000000e+00> : vector<128x8xf32>
      %24 = tpu.matmul %22, %23, %cst_18 {dimension_numbers = #tpu.dot_dimension_numbers<[1], [0], [0], [1], [0, 0, 1, 1], [], []>} : vector<128x64xf32>, vector<64x8xf32>, vector<128x8xf32> -> vector<128x8xf32>
      %25 = arith.truncf %24 : vector<128x8xf32> to vector<128x8xbf16>
      %c0_19 = arith.constant 0 : index
      %c0_20 = arith.constant 0 : index
      %26 = vector.load %arg7[%c0_19, %c0_20] : memref<128x8xbf16, #tpu.memory_space<vmem>>, vector<128x8xbf16>
      tpu.vector_store %arg7[%c0_19, %c0_20], %25 {strides = array<i32>} : memref<128x8xbf16, #tpu.memory_space<vmem>>, vector<128x8xbf16>,
    } else {
    }
    return
  }
  func.func @transform_0(%arg0: i32, %arg1: i32) -> (i32, i32) {
    %c0_i32 = arith.constant 0 : i32
    return %arg0, %arg1 : i32, i32
  }
  func.func @transform_1(%arg0: i32, %arg1: i32) -> (i32, i32) {
    %c0_i32 = arith.constant 0 : i32
    %c0_i32_0 = arith.constant 0 : i32
    %c0_i32_1 = arith.constant 0 : i32
    return %c0_i32, %c0_i32_0 : i32, i32
  }
  func.func @transform_2(%arg0: i32, %arg1: i32) -> (i32, i32) {
    %c0_i32 = arith.constant 0 : i32
    %c0_i32_0 = arith.constant 0 : i32
    %c0_i32_1 = arith.constant 0 : i32
    return %c0_i32, %c0_i32_0 : i32, i32
  }
  func.func @transform_3(%arg0: i32, %arg1: i32) -> (i32, i32) {
    %c0_i32 = arith.constant 0 : i32
    %c0_i32_0 = arith.constant 0 : i32
    %c0_i32_1 = arith.constant 0 : i32
    return %c0_i32, %c0_i32_0 : i32, i32
  }
  func.func @transform_4(%arg0: i32, %arg1: i32) -> (i32, i32) {
    %c0_i32 = arith.constant 0 : i32
    %c0_i32_0 = arith.constant 0 : i32
    %c0_i32_1 = arith.constant 0 : i32
    return %c0_i32, %c0_i32_0 : i32, i32
  }
  func.func @transform_5(%arg0: i32, %arg1: i32) -> (i32, i32) {
    %c0_i32 = arith.constant 0 : i32
    %c0_i32_0 = arith.constant 0 : i32
    return %arg0, %c0_i32 : i32, i32
  }
}

</mosaic_0001>

<bundles_post_ra>
// kernel: tpu_custom_call.1
= control target key start
LH: loop header
LB: loop body
LE: loop exit
PB: predicated region body
PF: predicated region fallthrough
CT: control target
= control target key end

     0   :  { %10 = vsyncpa [#allocation4], 0  ;;  %s2001_s0 = inlined_call_operand.hbm [shape: bf16[256,256], index: 0, kind: input, shape index: {}]   ;;  %s2002_s1 = inlined_call_operand.vmem [shape: bf16[256,16], index: 1, kind: input, shape index: {}]   ;;  %s2003_s2 = inlined_call_operand.vmem [shape: f32[16,64], index: 2, kind: input, shape index: {}]   ;;  %s2004_s3 = inlined_call_operand.vmem [shape: f32[1,64], index: 3, kind: input, shape index: {}]   ;;  %s2005_s4 = inlined_call_operand.vmem [shape: f32[64,8], index: 4, kind: input, shape index: {}]   ;;  %s2006_s5 = inlined_call_operand.vmem [shape: bf16[256,8], index: 5, kind: output, shape index: {}]  }
   0x1   :  { %12 = vsyncpa [#allocation4 + $0x1], 0  ;;  %s1694_s18 = smov 0   ;;  %s1696_s19 = smov 0  }
   0x2   :  { %s1698_s20 = smov 0   ;;  %s1700_s21 = smov 0  }
   0x3   :  { %s1702_s22 = smov 0   ;;  %s1704_s23 = smov 0  }
   0x4   :  { %s1706_s24 = smov 0   ;;  %s1708_s25 = smov 0  }
   0x5 LB: > { %s1168_s26 = sadd.s32 4294967295, %s1657_s25   ;;  %s27_s27 = sadd.s32 1, %s1649_s23  ;;  %s1657_s25 = sphi %s1708_s25, %s18_s25   ;;  %s1653_s24 = sphi %s1706_s24, %s2020_s24   ;;  %s1649_s23 = sphi %s1704_s23, %s2019_s23   ;;  %s1645_s22 = sphi %s1702_s22, %s2018_s22   ;;  %s1641_s21 = sphi %s1700_s21, %s2017_s21   ;;  %s1637_s20 = sphi %s1698_s20, %s2016_s20   ;;  %s1633_s19 = sphi %s1696_s19, %s2015_s19   ;;  %s1629_s18 = sphi %s1694_s18, %s2014_s18  }
   0x6   : > { %p28_p0 = scmp.ge.s32.totalorder %s27_s27, 2  ;;  %s30_s28 = sadd.s32 1, %s1653_s24 }
   0x7   : > { %s39_s29 = sadd.s32 1, %s1637_s20  ;;  %p46_p1 = scmp.ne.s32.totalorder %s1637_s20, %s1633_s19 }
   0x8   : > { %s2022_s27 = smov (%p28_p0, %s27_s27), 0  ;;  %s2024_s28 = smov (!%p28_p0, %s30_s28), %s1653_s24 }
   0x9   : > { %2008 = sst [smem:[#allocation6_spill]] %s2022_s27  ;;  %s35_s30 = ssub.s32 %s1649_s23, %s2022_s27 }
   0xa   : > { %p47_p2 = scmp.eq.s32.totalorder %s1657_s25, 0  ;;  %p32_p3 = scmp.ge.s32.totalorder %s2024_s28, 2 }
   0xb   : > { %p52_p4 = scmp.ne.s32.totalorder %s1633_s19, %s1629_s18  ;;  %p53_p6 = scmp.eq.s32.totalorder %s1168_s26, 0 }
   0xc   : > { %p1745_p5 = por %p47_p2, %p46_p1  ;;  %s2026_s28 = smov (%p32_p3, %s2024_s28), 0 }
   0xd   : > { %p1751_p7 = por %p53_p6, %p52_p4  ;;  %s34_s8 = ssub.s32 %s1653_s24, %s2026_s28 }
   0xe   : > { %p1476_p8 = scmp.lt.s32.totalorder %s1657_s25, 4  ;;  %s36_s9 = sor.u32 %s35_s30, %s34_s8 }
   0xf   : > { %s198_s10 = sand.u32 1, %s1637_s20   ;;  %p37_p9 = scmp.eq.s32.totalorder %s36_s9, 0 }
  0x10   : > { %s1172_s11 = sshll.u32 %s198_s10, 6  ;;  %s1251_s12 = sshll.u32 %s1653_s24, 5 }
  0x11   : > { %s1761_s13 = scalar_select %p37_p9, %s1637_s20, %s39_s29  }
  0x12   : > { %s208_s14 = sadd.s32 %s1649_s23, %s1251_s12  ;;  %s202_s16 = scalar_lea.vmem [#allocation3], %s1172_s11 }
  0x13   : > { %s1175_s15 = sshll.u32 %s208_s14, 6  ;;  %s211_s17 = sshll.u32 %s202_s16, 4  ;;  %s1769_s17 = int_to_ptr.vmem [resolvable:$true] %s211_s17 }
  0x14   : > { %s1767_s27 = scalar_lea.hbm %s2001_s0, %s1175_s15  ;;  %p1775_p10 = pnand %p1476_p8, %p1745_p5 }
  0x15   : > { %s1780_s30 = scalar_lea.sflag [#allocation4], %s198_s10  ;;  %s1561_s8 = scalar_lea.hbm %s1767_s27, 1024 }
  0x16   : > { %p1562_p12 = scmp.ne.s32.totalorder %s1767_s27, %s1561_s8  ;;  %p1563_p13 = pneg %p1775_p10 }
  0x17   : > { %s1566_s11 = scalar_lea.hbm %s2001_s0, 4096  ;;  %p1567_p2 = scmp.lt.u32.totalorder %s1767_s27, %s2001_s0 }
  0x18   : > { %p1564_p0 = pnand %p1563_p13, %p1562_p12  ;;  %p1568_p3 = scmp.lt.u32.totalorder %s1566_s11, %s1561_s8 }
  0x19   : > { %p1570_p5 = scmp.lt.u32.totalorder %s1561_s8, %s1767_s27 }
  0x1a   : > { %p1565_p1 = pneg %p1564_p0  ;;  %p1569_p4 = por %p1568_p3, %p1567_p2 }
  0x1c   : > { %p1571_p6 = por %p1570_p5, %p1569_p4 }
  0x1e   : > { %p1572_p8 = pnand %p1571_p6, %p1565_p1 }
  0x20   : > { %1575 = shalt.err (!%p1572_p8)
}
  0x21   : > { %s1576_s10 = scalar_lea.vmem %s1769_s17, 1024  ;;  %s1659_s15 = smov [#allocation3]  }
  0x22   : > { %p1577_p9 = scmp.ne.s32.totalorder %s1769_s17, %s1576_s10  ;;  %s1581_s16 = sshll.u32 %s1659_s15, 4  ;;  %s1582_s16 = int_to_ptr.vmem [resolvable:$false] %s1581_s16 }
  0x23   : > { %s1583_s18 = scalar_lea.vmem %s1582_s16, 2048  ;;  %p1584_p11 = scmp.lt.s32.totalorder %s1769_s17, %s1582_s16 }
  0x24   : > { %p1579_p12 = pnand %p1577_p9, %p1563_p13  ;;  %p1585_p2 = scmp.lt.s32.totalorder %s1583_s18, %s1576_s10 }
  0x26   : > { %p1580_p0 = pneg %p1579_p12  ;;  %p1586_p3 = por %p1585_p2, %p1584_p11 }
  0x28   : > { %p1587_p4 = pnand %p1586_p3, %p1580_p0 }
  0x2a   : > { %1590 = shalt.err (!%p1587_p4)
}
  0x2b   : > { %s1660_s26 = smov 128   ;;  %s1661_s8 = smov 64  }
  0x2c   : > { %s1662_s9 = smov 4   ;;  %p219_p13 = scmp.lt.s32.totalorder %s1657_s25, 5 }
  0x2d   : > { %1475 = dma.hbm_to_vmem [thread:$0]  (!%p1775_p10), %s1767_s27, 1024, %s1769_s17, %s1780_s30, %s1660_s26, %s1661_s8, %s1662_s9  }
  0x2e   : > { %p2012_p1 = scmp.ge.s32.totalorder %s1657_s25, 1 }
  0x30   : > { %p220_p5 = pnand %p2012_p1, %p219_p13 }
  0x31   : > { %s225_s6 = sand.u32 (!%p220_p5), 1, %s1633_s19  }
  0x32   : > { %223 = sbr.rel (%p220_p5) target bundleno = 792 (0x318), region = 40  ;;  %s1177_s11 = sshll.u32 (!%p220_p5), %s225_s6, 6 }
  0x33   : > { %s226_s12 = scalar_lea.sflag (!%p220_p5), [#allocation4], %s225_s6  ;;  %s1812_s14 = scalar_lea.vmem (!%p220_p5), [#allocation3], %s1177_s11 }
  0x39   : > { %1624 = dma.done.wait (%p1751_p7), %s226_s12, 1024  }
  0x3a   : > { %1626 = vsyncadd (%p1751_p7), %s226_s12, 4294966272  ;;  %s1178_s10 = sshll.u32 %s1645_s22, 4  ;;  %p1180_p10 = scmp.ne.s32.totalorder %s1641_s21, 0 }
  0x3b   : > { %p258_p11 = scmp.lt.s32.totalorder %s1178_s10, 31  ;;  %vm268_vm0 = vcmask (!%p1180_p10), 130048   ;;  %v1663_v0 = vmov (!%p1180_p10), 0.0  }
  0x3c   : > { %267 = sbr.rel (%p1180_p10) target bundleno = 68 (0x44), region = 48  ;;  %269 = vst.msk [vmem:[#allocation2] sm:$0xff] (!%p1180_p10), %vm268_vm0, %v1663_v0  ;;  %270 = vst.msk [vmem:[#allocation2 + $0x8] sm:$0xff] (!%p1180_p10), %vm268_vm0, %v1663_v0 }
  0x3d   : > { %s2028_s10 = smov (!%p258_p11, %s1178_s10), 31  ;;  %271 = vst.msk [vmem:[#allocation2 + $0x10] sm:$0xff] (!%p1180_p10), %vm268_vm0, %v1663_v0  ;;  %272 = vst.msk [vmem:[#allocation2 + $0x18] sm:$0xff] (!%p1180_p10), %vm268_vm0, %v1663_v0 }
  0x3e   : > { %s1179_s27 = sshll.u32 %s2028_s10, 2  ;;  %273 = vst.msk [vmem:[#allocation2 + $0x20] sm:$0xff] (!%p1180_p10), %vm268_vm0, %v1663_v0  ;;  %274 = vst.msk [vmem:[#allocation2 + $0x28] sm:$0xff] (!%p1180_p10), %vm268_vm0, %v1663_v0 }
  0x3f   : > { %s1822_s30 = scalar_lea.vmem %s2006_s5, %s1179_s27  ;;  %275 = vst.msk [vmem:[#allocation2 + $0x30] sm:$0xff] (!%p1180_p10), %vm268_vm0, %v1663_v0  ;;  %276 = vst.msk [vmem:[#allocation2 + $0x38] sm:$0xff] (!%p1180_p10), %vm268_vm0, %v1663_v0 }
  0x40   : > { %277 = vst.msk [vmem:[#allocation2 + $0x40] sm:$0xff] (!%p1180_p10), %vm268_vm0, %v1663_v0  ;;  %278 = vst.msk [vmem:[#allocation2 + $0x48] sm:$0xff] (!%p1180_p10), %vm268_vm0, %v1663_v0 }
  0x41   : > { %279 = vst.msk [vmem:[#allocation2 + $0x50] sm:$0xff] (!%p1180_p10), %vm268_vm0, %v1663_v0  ;;  %280 = vst.msk [vmem:[#allocation2 + $0x58] sm:$0xff] (!%p1180_p10), %vm268_vm0, %v1663_v0 }
  0x42   : > { %281 = vst.msk [vmem:[#allocation2 + $0x60] sm:$0xff] (!%p1180_p10), %vm268_vm0, %v1663_v0  ;;  %282 = vst.msk [vmem:[#allocation2 + $0x68] sm:$0xff] (!%p1180_p10), %vm268_vm0, %v1663_v0 }
  0x43   : > { %283 = vst.msk [vmem:[#allocation2 + $0x70] sm:$0xff] %vm268_vm0, %v1663_v0  ;;  %284 = vst.msk [vmem:[#allocation2 + $0x78] sm:$0xff] %vm268_vm0, %v1663_v0 }
  0x44 PF: > { %s1181_s22 = sshll.u32 %s1641_s21, 7  ;;  %v1553_v1 = vld [vmem:[%s1812_s14] sm:$0xff]   ;;  %v1555_v11 = vld [vmem:[%s1812_s14 + $0x8] sm:$0xff]   ;;  %v1557_v13 = vld [vmem:[%s1812_s14 + $0x10] sm:$0xff]   ;;  %vm547_vm1 = vcmask 130048   ;;  %p1199_p7 = scmp.ne.s32.totalorder %s1641_s21, 1 }
  0x45   : > { %s286_s7 = sshra.s32 %s1181_s22, 3  ;;  %v1554_v2 = vld [vmem:[%s1812_s14 + $0x20] sm:$0xff]   ;;  %1342 = vmatprep.mubr.bf16.mxu0 %v1553_v1  ;;  %v1556_v12 = vld [vmem:[%s1812_s14 + $0x28] sm:$0xff]   ;;  %v1558_v14 = vld [vmem:[%s1812_s14 + $0x30] sm:$0xff]   ;;  %vm810_vm2 = vcmask (!%p1199_p7), 523264   ;;  %vm1068_vm3 = vcmask (!%p1199_p7), 60416  }
  0x46   : > { %s1182_s15 = sshll.u32 %s286_s7, 2  ;;  %1350 = vmatprep.mubr.bf16.mxu1 %v1554_v2  ;;  %v1559_v15 = vld [vmem:[%s1812_s14 + $0x18] sm:$0xff]   ;;  %v308_v17 = vld [vmem:[#allocation2 + $0x10] sm:$0xff]  ;;  %v306_v19 = vld [vmem:[#allocation2] sm:$0xff] }
  0x47   : > { %s1847_s26 = scalar_lea.vmem %s2002_s1, %s1182_s15  ;;  %v1560_v16 = vld [vmem:[%s1812_s14 + $0x38] sm:$0xff]   ;;  %v307_v29 = vld [vmem:[#allocation2 + $0x8] sm:$0xff]  ;;  %v312_v41 = vld [vmem:[#allocation2 + $0x30] sm:$0xff] }
  0x48   : > { %v1545_v3 = vld [vmem:[%s1847_s26] sm:$0xff]   ;;  %v1546_v4 = vld [vmem:[%s1847_s26 + $0x8] sm:$0xff]   ;;  %v1547_v5 = vld [vmem:[%s1847_s26 + $0x10] sm:$0xff]  }
  0x49   : > { %1326 = vmatprep.subr.bf16.mxu0 %v1545_v3  ;;  %1446 = vmatprep.subr.bf16.mxu1 %v1545_v3  ;;  %v1548_v6 = vld [vmem:[%s1847_s26 + $0x18] sm:$0xff]   ;;  %v1549_v7 = vld [vmem:[%s1847_s26 + $0x20] sm:$0xff]   ;;  %v1550_v8 = vld [vmem:[%s1847_s26 + $0x28] sm:$0xff]  }
  0x4a   : > { %1327 = vmatpush3.bf16.msra.mxu0 %v1545_v3  ;;  %1454 = vmatpush3.bf16.msra.mxu1 %v1545_v3  ;;  %v1551_v9 = vld [vmem:[%s1847_s26 + $0x30] sm:$0xff]   ;;  %v1552_v10 = vld [vmem:[%s1847_s26 + $0x38] sm:$0xff]   ;;  %v314_v20 = vld [vmem:[#allocation2 + $0x40] sm:$0xff] }
  0x4b   : > { %1328 = vmatprep.subr.bf16.mxu0 %v1546_v4  ;;  %1447 = vmatprep.subr.bf16.mxu1 %v1546_v4  ;;  %v316_v18 = vld [vmem:[#allocation2 + $0x50] sm:$0xff]  ;;  %v309_v23 = vld [vmem:[#allocation2 + $0x18] sm:$0xff]  ;;  %v315_v30 = vld [vmem:[#allocation2 + $0x48] sm:$0xff] }
  0x4c   : > { %v317_v24 = vld [vmem:[#allocation2 + $0x58] sm:$0xff]  ;;  %v320_v42 = vld [vmem:[#allocation2 + $0x70] sm:$0xff]  ;;  %v310_v43 = vld [vmem:[#allocation2 + $0x20] sm:$0xff] }
  0x4d   : > { %v318_v44 = vld [vmem:[#allocation2 + $0x60] sm:$0xff]  ;;  %v313_v47 = vld [vmem:[#allocation2 + $0x38] sm:$0xff]  ;;  %v311_v53 = vld [vmem:[#allocation2 + $0x28] sm:$0xff] }
  0x4e   : > { %1329 = vmatpush3.bf16.msra.mxu0 %v1546_v4  ;;  %1455 = vmatpush3.bf16.msra.mxu1 %v1546_v4  ;;  %v321_v48 = vld [vmem:[#allocation2 + $0x78] sm:$0xff]  ;;  %v319_v54 = vld [vmem:[#allocation2 + $0x68] sm:$0xff]  ;;  %v584_v1 = vld [vmem:[%s2003_s2] sm:$0xff] (!%p1199_p7) }
  0x4f   : > { %1330 = vmatprep.subr.bf16.mxu0 %v1547_v5  ;;  %1448 = vmatprep.subr.bf16.mxu1 %v1547_v5  ;;  %v585_v2 = vld [vmem:[%s2003_s2 + $0x8] sm:$0xff] (!%p1199_p7) }
  0x50   : > { %v1426_v4 = vpack.c.bf16 (!%p1199_p7), %v585_v2, %v584_v1 }
  0x52   : > { %1331 = vmatpush3.bf16.msra.mxu0 %v1547_v5  ;;  %1456 = vmatpush3.bf16.msra.mxu1 %v1547_v5 }
  0x53   : > { %1332 = vmatprep.subr.bf16.mxu0 %v1548_v6  ;;  %1449 = vmatprep.subr.bf16.mxu1 %v1548_v6 }
  0x56   : > { %1333 = vmatpush3.bf16.msra.mxu0 %v1548_v6  ;;  %1457 = vmatpush3.bf16.msra.mxu1 %v1548_v6 }
  0x57   : > { %1334 = vmatprep.subr.bf16.mxu0 %v1549_v7  ;;  %1450 = vmatprep.subr.bf16.mxu1 %v1549_v7 }
  0x5a   : > { %1335 = vmatpush3.bf16.msra.mxu0 %v1549_v7  ;;  %1458 = vmatpush3.bf16.msra.mxu1 %v1549_v7  ;;  %v802_v7 = vld [vmem:[%s2005_s4] sm:$0xff] (!%p1199_p7) }
  0x5b   : > { %1336 = vmatprep.subr.bf16.mxu0 %v1550_v8  ;;  %1451 = vmatprep.subr.bf16.mxu1 %v1550_v8 }
  0x5e   : > { %1337 = vmatpush3.bf16.msra.mxu0 %v1550_v8  ;;  %1459 = vmatpush3.bf16.msra.mxu1 %v1550_v8  ;;  %v803_v8 = vld [vmem:[%s2005_s4 + $0x8] sm:$0xff] (!%p1199_p7) }
  0x5f   : > { %1338 = vmatprep.subr.bf16.mxu0 %v1551_v9  ;;  %1452 = vmatprep.subr.bf16.mxu1 %v1551_v9 }
  0x62   : > { %1339 = vmatpush3.bf16.msra.mxu0 %v1551_v9  ;;  %1460 = vmatpush3.bf16.msra.mxu1 %v1551_v9  ;;  %v804_v9 = vld [vmem:[%s2005_s4 + $0x10] sm:$0xff] (!%p1199_p7) }
  0x63   : > { %1340 = vmatprep.subr.bf16.mxu0 %v1552_v10  ;;  %1453 = vmatprep.subr.bf16.mxu1 %v1552_v10 }
  0x66   : > { %1341 = vmatpush3.bf16.msra.mxu0 %v1552_v10  ;;  %1461 = vmatpush3.bf16.msra.mxu1 %v1552_v10  ;;  %v1430_v10 = vpack.c.bf16 (!%p1199_p7), %v803_v8, %v802_v7 }
  0x67   : > { %1427 = vmatprep.subr.bf16.mxu0 (!%p1199_p7), %v1426_v4 }
  0x68   : > { %1462 = vmatprep.subr.bf16.mxu1 (!%p1199_p7), %v1430_v10 }
  0x69   : > { %1343 = vmatmul.mubr.bf16.vlgmr.msra.gmra.mrb[0].mxu0 %v1555_v11  ;;  %1351 = vmatmul.mubr.bf16.vlgmr.msra.gmra.mrb[0].mxu1 %v1556_v12  ;;  %v805_v11 = vld [vmem:[%s2005_s4 + $0x18] sm:$0xff] (!%p1199_p7) }
  0x6a   : > { %1346 = vmatprep.mubr.bf16.mxu0 %v1557_v13  ;;  %1354 = vmatprep.mubr.bf16.mxu1 %v1558_v14  ;;  %v1434_v13 = vpack.c.bf16 (!%p1199_p7), %v805_v11, %v804_v9  ;;  %v806_v14 = vld [vmem:[%s2005_s4 + $0x20] sm:$0xff] (!%p1199_p7) }
  0x6b   : > { %1429 = vmatpush3.bf16.msra.mxu0 (!%p1199_p7), %v1426_v4  ;;  %1466 = vmatpush3.bf16.msra.mxu1 (!%p1199_p7), %v1430_v10 }
  0x6c   : > { %1431 = vmatprep.subr.bf16.mxu0 (!%p1199_p7), %v1430_v10  ;;  %1463 = vmatprep.subr.bf16.mxu1 (!%p1199_p7), %v1434_v13 }
  0x6f   : > { %1467 = vmatpush3.bf16.msra.mxu1 (!%p1199_p7), %v1434_v13 }
  0x71   : > { %1347 = vmatmul.mubr.bf16.gmra.mrb[4].mxu0 %v1559_v15  ;;  %1355 = vmatmul.mubr.bf16.gmra.mrb[4].mxu1 %v1560_v16  ;;  %v807_v15 = vld [vmem:[%s2005_s4 + $0x28] sm:$0xff] (!%p1199_p7) }
 0x13c   : > { %v1344_v21 = vpop.f32.mrb[0].mxu0  ;;  %v1352_v22 = vpop.f32.mrb[0].mxu1 }
 0x13d   : > { %v533_v25 = vadd.f32 %v1344_v21, %v308_v17  ;;  %v541_v26 = vadd.f32 %v1352_v22, %v316_v18  ;;  %v468_v27 = vpop.f32.mrb[1].mxu0  ;;  %v500_v28 = vpop.f32.mrb[1].mxu1  ;;  %v1438_v17 = vpack.c.bf16 (!%p1199_p7), %v807_v15, %v806_v14 }
 0x13e   : > { %v531_v31 = vadd.f32 %v468_v27, %v306_v19  ;;  %v539_v32 = vadd.f32 %v500_v28, %v314_v20  ;;  %v1345_v33 = vpop.f32.mrb[2].mxu0  ;;  %v1353_v34 = vpop.f32.mrb[2].mxu1 }
 0x13f   : > { %550 = vst.msk [vmem:[#allocation2 + $0x10] sm:$0xff] %vm547_vm1, %v533_v25  ;;  %558 = vst.msk [vmem:[#allocation2 + $0x50] sm:$0xff] %vm547_vm1, %v541_v26  ;;  %v534_v35 = vadd.f32 %v1345_v33, %v309_v23  ;;  %v542_v36 = vadd.f32 %v1353_v34, %v317_v24  ;;  %v471_v37 = vpop.f32.mrb[3].mxu0  ;;  %v503_v38 = vpop.f32.mrb[3].mxu1  ;;  %1464 = vmatprep.subr.bf16.mxu1 (!%p1199_p7), %v1438_v17 }
 0x140   : > { %548 = vst.msk [vmem:[#allocation2] sm:$0xff] %vm547_vm1, %v531_v31  ;;  %556 = vst.msk [vmem:[#allocation2 + $0x40] sm:$0xff] %vm547_vm1, %v539_v32  ;;  %v532_v39 = vadd.f32 %v471_v37, %v307_v29  ;;  %v540_v40 = vadd.f32 %v503_v38, %v315_v30  ;;  %1468 = vmatpush3.bf16.msra.mxu1 (!%p1199_p7), %v1438_v17  ;;  %v808_v29 = vld [vmem:[%s2005_s4 + $0x30] sm:$0xff] (!%p1199_p7)  ;;  %v809_v30 = vld [vmem:[%s2005_s4 + $0x38] sm:$0xff] (!%p1199_p7) }
 0x141   : > { %551 = vst.msk [vmem:[#allocation2 + $0x18] sm:$0xff] %vm547_vm1, %v534_v35  ;;  %559 = vst.msk [vmem:[#allocation2 + $0x58] sm:$0xff] %vm547_vm1, %v542_v36  ;;  %v1442_v31 = vpack.c.bf16 (!%p1199_p7), %v809_v30, %v808_v29  ;;  %v1200_v32 = vld [vmem:[%s2004_s3] ss:$0 sm:$0xff] (!%p1199_p7) }
 0x142   : > { %549 = vst.msk [vmem:[#allocation2 + $0x8] sm:$0xff] %vm547_vm1, %v532_v39  ;;  %557 = vst.msk [vmem:[#allocation2 + $0x48] sm:$0xff] %vm547_vm1, %v540_v40 }
 0x143   : > { %1465 = vmatprep.subr.bf16.mxu1 (!%p1199_p7), %v1442_v31 }
 0x144   : > { %v1348_v45 = vpop.f32.mrb[4].mxu0  ;;  %v1356_v46 = vpop.f32.mrb[4].mxu1  ;;  %567 = sbr.rel (%p1199_p7) target bundleno = 792 (0x318), region = 52  ;;  %1469 = vmatpush3.bf16.msra.mxu1 (!%p1199_p7), %v1442_v31 }
 0x145   : > { %v537_v49 = vadd.f32 %v1348_v45, %v312_v41  ;;  %v545_v50 = vadd.f32 %v1356_v46, %v320_v42  ;;  %v484_v51 = vpop.f32.mrb[5].mxu0  ;;  %v516_v52 = vpop.f32.mrb[5].mxu1 }
 0x146   : > { %v535_v55 = vadd.f32 %v484_v51, %v310_v43  ;;  %v543_v56 = vadd.f32 %v516_v52, %v318_v44  ;;  %v1349_v57 = vpop.f32.mrb[6].mxu0  ;;  %v1357_v58 = vpop.f32.mrb[6].mxu1  ;;  %v570_v6 = vld [vmem:[#allocation2 + $0x10] sm:$0xff] (!%p1199_p7) }
 0x147   : > { %554 = vst.msk [vmem:[#allocation2 + $0x30] sm:$0xff] %vm547_vm1, %v537_v49  ;;  %562 = vst.msk [vmem:[#allocation2 + $0x70] sm:$0xff] %vm547_vm1, %v545_v50  ;;  %v538_v59 = vadd.f32 %v1349_v57, %v313_v47  ;;  %v546_v60 = vadd.f32 %v1357_v58, %v321_v48  ;;  %v487_v61 = vpop.f32.mrb[7].mxu0  ;;  %v519_v62 = vpop.f32.mrb[7].mxu1  ;;  %v568_v3 = vld [vmem:[#allocation2] sm:$0xff] (!%p1199_p7)  ;;  %v578_v23 = vld [vmem:[#allocation2 + $0x50] sm:$0xff] (!%p1199_p7) }
 0x148   : > { %552 = vst.msk [vmem:[#allocation2 + $0x20] sm:$0xff] %vm547_vm1, %v535_v55  ;;  %560 = vst.msk [vmem:[#allocation2 + $0x60] sm:$0xff] %vm547_vm1, %v543_v56  ;;  %v536_v63 = vadd.f32 %v487_v61, %v311_v53  ;;  %v544_v0 = vadd.f32 %v519_v62, %v319_v54  ;;  %1362 = vmatprep.mubr.msk.f32.mxu0 (!%p1199_p7), %vm547_vm1, %v568_v3  ;;  %v571_v12 = vld [vmem:[#allocation2 + $0x18] sm:$0xff] (!%p1199_p7)  ;;  %v576_v21 = vld [vmem:[#allocation2 + $0x40] sm:$0xff] (!%p1199_p7) }
 0x149   : > { %555 = vst.msk [vmem:[#allocation2 + $0x38] sm:$0xff] %vm547_vm1, %v538_v59  ;;  %563 = vst.msk [vmem:[#allocation2 + $0x78] sm:$0xff] %vm547_vm1, %v546_v60  ;;  %v569_v5 = vld [vmem:[#allocation2 + $0x8] sm:$0xff] (!%p1199_p7)  ;;  %v579_v24 = vld [vmem:[#allocation2 + $0x58] sm:$0xff] (!%p1199_p7) }
 0x14a   : > { %553 = vst.msk [vmem:[#allocation2 + $0x28] sm:$0xff] %vm547_vm1, %v536_v63  ;;  %561 = vst.msk [vmem:[#allocation2 + $0x68] sm:$0xff] %vm547_vm1, %v544_v0  ;;  %1363 = vmatmul.mubr.msk.f32.vlgmr.msra.gmra.mrb[0].mxu0 (!%p1199_p7), %vm547_vm1, %v569_v5  ;;  %v577_v22 = vld [vmem:[#allocation2 + $0x48] sm:$0xff] (!%p1199_p7) }
 0x14b   : > { %1365 = vmatprep.mubr.msk.f32.mxu0 %vm547_vm1, %v570_v6  ;;  %1433 = vmatpush3.bf16.msra.mxu0 %v1430_v10 }
 0x14c   : > { %1435 = vmatprep.subr.bf16.mxu0 %v1434_v13 }
 0x14e   : > { %1366 = vmatmul.mubr.msk.f32.gmra.mrb[2].mxu0 %vm547_vm1, %v571_v12  ;;  %v574_v19 = vld [vmem:[#allocation2 + $0x30] sm:$0xff] }
 0x14f   : > { %v572_v16 = vld [vmem:[#allocation2 + $0x20] sm:$0xff]  ;;  %1437 = vmatpush3.bf16.msra.mxu0 %v1434_v13  ;;  %v582_v27 = vld [vmem:[#allocation2 + $0x70] sm:$0xff] }
 0x150   : > { %1368 = vmatprep.mubr.msk.f32.mxu0 %vm547_vm1, %v572_v16  ;;  %1439 = vmatprep.subr.bf16.mxu0 %v1438_v17  ;;  %v575_v20 = vld [vmem:[#allocation2 + $0x38] sm:$0xff]  ;;  %v580_v25 = vld [vmem:[#allocation2 + $0x60] sm:$0xff] }
 0x151   : > { %v573_v18 = vld [vmem:[#allocation2 + $0x28] sm:$0xff]  ;;  %v583_v28 = vld [vmem:[#allocation2 + $0x78] sm:$0xff] }
 0x152   : > { %1369 = vmatmul.mubr.msk.f32.gmra.mrb[4].mxu0 %vm547_vm1, %v573_v18  ;;  %v581_v26 = vld [vmem:[#allocation2 + $0x68] sm:$0xff] }
 0x153   : > { %1371 = vmatprep.mubr.msk.f32.mxu0 %vm547_vm1, %v574_v19  ;;  %1441 = vmatpush3.bf16.msra.mxu0 %v1438_v17 }
 0x154   : > { %1443 = vmatprep.subr.bf16.mxu0 %v1442_v31 }
 0x156   : > { %1372 = vmatmul.mubr.msk.f32.gmra.mrb[6].mxu0 %vm547_vm1, %v575_v20 }
 0x157   : > { %1374 = vmatprep.mubr.msk.f32.mxu0 %vm547_vm1, %v576_v21  ;;  %1445 = vmatpush3.bf16.msra.mxu0 %v1442_v31 }
 0x15a   : > { %1375 = vmatmul.mubr.msk.f32.gmra.mrb[8].mxu0 %vm547_vm1, %v577_v22 }
 0x15b   : > { %1377 = vmatprep.mubr.msk.f32.mxu0 %vm547_vm1, %v578_v23 }
 0x15e   : > { %1378 = vmatmul.mubr.msk.f32.gmra.mrb[10].mxu0 %vm547_vm1, %v579_v24 }
 0x15f   : > { %1380 = vmatprep.mubr.msk.f32.mxu0 %vm547_vm1, %v580_v25 }
 0x162   : > { %1381 = vmatmul.mubr.msk.f32.gmra.mrb[12].mxu0 %vm547_vm1, %v581_v26 }
 0x163   : > { %1383 = vmatprep.mubr.msk.f32.mxu0 %vm547_vm1, %v582_v27 }
 0x166   : > { %1384 = vmatmul.mubr.msk.f32.gmra.mrb[14].mxu0 %vm547_vm1, %v583_v28 }
 0x21d   : > { %v1364_v33 = vpop.f32.mrb[0].mxu0 }
 0x21e   : > { %v713_v34 = vadd.f32 %v1364_v33, %v1200_v32  ;;  %v707_v35 = vpop.f32.mrb[1].mxu0 }
 0x21f   : > { %v708_v36 = vadd.f32 %v1200_v32, %v707_v35 }
 0x220   : > { %v787_v39 = vmax.f32 %v713_v34, 0.0 }
 0x221   : > { %v786_v37 = vmax.f32 %v708_v36, 0.0  ;;  %v1367_v38 = vpop.f32.mrb[2].mxu0 }
 0x222   : > { %v723_v40 = vadd.f32 %v1367_v38, %v1200_v32  ;;  %v717_v41 = vpop.f32.mrb[3].mxu0 }
 0x223   : > { %v718_v42 = vadd.f32 %v1200_v32, %v717_v41  ;;  %1402 = vmatprep.mubr.msk.f32.mxu0 %vm810_vm2, %v786_v37 }
 0x224   : > { %1403 = vmatmul.mubr.msk.f32.vlgmr.msra.gmra.mrb[16].mxu0 %vm810_vm2, %v787_v39  ;;  %v789_v45 = vmax.f32 %v723_v40, 0.0 }
 0x225   : > { %v788_v43 = vmax.f32 %v718_v42, 0.0  ;;  %v1370_v44 = vpop.f32.mrb[4].mxu0 }
 0x226   : > { %v733_v46 = vadd.f32 %v1370_v44, %v1200_v32  ;;  %v727_v47 = vpop.f32.mrb[5].mxu0 }
 0x227   : > { %v728_v48 = vadd.f32 %v1200_v32, %v727_v47  ;;  %1405 = vmatprep.mubr.msk.f32.mxu1 %vm810_vm2, %v788_v43 }
 0x228   : > { %1406 = vmatmul.mubr.msk.f32.vlgmr.msra.gmra.mrb[0].mxu1 %vm810_vm2, %v789_v45  ;;  %v791_v51 = vmax.f32 %v733_v46, 0.0 }
 0x229   : > { %v790_v49 = vmax.f32 %v728_v48, 0.0  ;;  %v1373_v50 = vpop.f32.mrb[6].mxu0 }
 0x22a   : > { %v743_v52 = vadd.f32 %v1373_v50, %v1200_v32  ;;  %v737_v53 = vpop.f32.mrb[7].mxu0 }
 0x22b   : > { %v738_v54 = vadd.f32 %v1200_v32, %v737_v53  ;;  %1408 = vmatprep.mubr.msk.f32.mxu1 %vm810_vm2, %v790_v49 }
 0x22c   : > { %1409 = vmatmul.mubr.msk.f32.gmra.mrb[2].mxu1 %vm810_vm2, %v791_v51  ;;  %v793_v57 = vmax.f32 %v743_v52, 0.0 }
 0x22d   : > { %v792_v55 = vmax.f32 %v738_v54, 0.0  ;;  %v1376_v56 = vpop.f32.mrb[8].mxu0 }
 0x22e   : > { %v753_v58 = vadd.f32 %v1376_v56, %v1200_v32  ;;  %v747_v59 = vpop.f32.mrb[9].mxu0 }
 0x22f   : > { %v748_v60 = vadd.f32 %v1200_v32, %v747_v59  ;;  %1411 = vmatprep.mubr.msk.f32.mxu1 %vm810_vm2, %v792_v55 }
 0x230   : > { %1412 = vmatmul.mubr.msk.f32.gmra.mrb[4].mxu1 %vm810_vm2, %v793_v57  ;;  %v795_v63 = vmax.f32 %v753_v58, 0.0 }
 0x231   : > { %v794_v61 = vmax.f32 %v748_v60, 0.0  ;;  %v1379_v62 = vpop.f32.mrb[10].mxu0 }
 0x232   : > { %v763_v0 = vadd.f32 %v1379_v62, %v1200_v32  ;;  %v757_v1 = vpop.f32.mrb[11].mxu0 }
 0x233   : > { %v758_v2 = vadd.f32 %v1200_v32, %v757_v1  ;;  %1414 = vmatprep.mubr.msk.f32.mxu1 %vm810_vm2, %v794_v61 }
 0x234   : > { %1415 = vmatmul.mubr.msk.f32.gmra.mrb[6].mxu1 %vm810_vm2, %v795_v63  ;;  %v797_v5 = vmax.f32 %v763_v0, 0.0 }
 0x235   : > { %v796_v3 = vmax.f32 %v758_v2, 0.0  ;;  %v1382_v4 = vpop.f32.mrb[12].mxu0 }
 0x236   : > { %v773_v6 = vadd.f32 %v1382_v4, %v1200_v32  ;;  %v767_v7 = vpop.f32.mrb[13].mxu0 }
 0x237   : > { %v768_v8 = vadd.f32 %v1200_v32, %v767_v7  ;;  %1417 = vmatprep.mubr.msk.f32.mxu1 %vm810_vm2, %v796_v3 }
 0x238   : > { %1418 = vmatmul.mubr.msk.f32.gmra.mrb[8].mxu1 %vm810_vm2, %v797_v5  ;;  %v799_v11 = vmax.f32 %v773_v6, 0.0 }
 0x239   : > { %v798_v9 = vmax.f32 %v768_v8, 0.0  ;;  %v1385_v10 = vpop.f32.mrb[14].mxu0 }
 0x23a   : > { %v783_v12 = vadd.f32 %v1385_v10, %v1200_v32  ;;  %v777_v13 = vpop.f32.mrb[15].mxu0 }
 0x23b   : > { %v778_v14 = vadd.f32 %v1200_v32, %v777_v13  ;;  %1420 = vmatprep.mubr.msk.f32.mxu1 %vm810_vm2, %v798_v9 }
 0x23c   : > { %1421 = vmatmul.mubr.msk.f32.gmra.mrb[10].mxu1 %vm810_vm2, %v799_v11  ;;  %v801_v16 = vmax.f32 %v783_v12, 0.0 }
 0x23d   : > { %v800_v15 = vmax.f32 %v778_v14, 0.0 }
 0x23f   : > { %1423 = vmatprep.mubr.msk.f32.mxu1 %vm810_vm2, %v800_v15 }
 0x240   : > { %1424 = vmatmul.mubr.msk.f32.gmra.mrb[12].mxu1 %vm810_vm2, %v801_v16 }
 0x2f7   : > { %v1404_v17 = vpop.f32.mrb[16].mxu0 }
 0x2f8   : > { %v1253_v18 = vpack.c.bf16 %v1404_v17, %v1404_v17  ;;  %v925_v19 = vpop.f32.mrb[17].mxu0 }
 0x2f9   : > { %v1252_v20 = vpack.c.bf16 %v925_v19, %v925_v19 }
 0x2fa   : > { %1070 = vst.msk [vmem:[%s1822_s30 + $0x4] sm:$0xf] %vm1068_vm3, %v1253_v18 }
 0x2fb   : > { %1069 = vst.msk [vmem:[%s1822_s30] sm:$0xf] %vm1068_vm3, %v1252_v20  ;;  %v1407_v21 = vpop.f32.mrb[0].mxu1 }
 0x2fc   : > { %v1255_v22 = vpack.c.bf16 %v1407_v21, %v1407_v21  ;;  %v935_v23 = vpop.f32.mrb[1].mxu1 }
 0x2fd   : > { %v1254_v24 = vpack.c.bf16 %v935_v23, %v935_v23 }
 0x2fe   : > { %1072 = vst.msk [vmem:[%s1822_s30 + $0xc] sm:$0xf] %vm1068_vm3, %v1255_v22 }
 0x2ff   : > { %1071 = vst.msk [vmem:[%s1822_s30 + $0x8] sm:$0xf] %vm1068_vm3, %v1254_v24  ;;  %v1410_v25 = vpop.f32.mrb[2].mxu1 }
 0x300   : > { %v1257_v26 = vpack.c.bf16 %v1410_v25, %v1410_v25  ;;  %v945_v27 = vpop.f32.mrb[3].mxu1 }
 0x301   : > { %v1256_v28 = vpack.c.bf16 %v945_v27, %v945_v27 }
 0x302   : > { %1074 = vst.msk [vmem:[%s1822_s30 + $0x14] sm:$0xf] %vm1068_vm3, %v1257_v26 }
 0x303   : > { %1073 = vst.msk [vmem:[%s1822_s30 + $0x10] sm:$0xf] %vm1068_vm3, %v1256_v28  ;;  %v1413_v29 = vpop.f32.mrb[4].mxu1 }
 0x304   : > { %v1259_v30 = vpack.c.bf16 %v1413_v29, %v1413_v29  ;;  %v955_v31 = vpop.f32.mrb[5].mxu1 }
 0x305   : > { %v1258_v32 = vpack.c.bf16 %v955_v31, %v955_v31 }
 0x306   : > { %1076 = vst.msk [vmem:[%s1822_s30 + $0x1c] sm:$0xf] %vm1068_vm3, %v1259_v30 }
 0x307   : > { %1075 = vst.msk [vmem:[%s1822_s30 + $0x18] sm:$0xf] %vm1068_vm3, %v1258_v32  ;;  %v1416_v33 = vpop.f32.mrb[6].mxu1 }
 0x308   : > { %v1261_v34 = vpack.c.bf16 %v1416_v33, %v1416_v33  ;;  %v965_v35 = vpop.f32.mrb[7].mxu1 }
 0x309   : > { %v1260_v36 = vpack.c.bf16 %v965_v35, %v965_v35 }
 0x30a   : > { %1078 = vst.msk [vmem:[%s1822_s30 + $0x24] sm:$0xf] %vm1068_vm3, %v1261_v34 }
 0x30b   : > { %1077 = vst.msk [vmem:[%s1822_s30 + $0x20] sm:$0xf] %vm1068_vm3, %v1260_v36  ;;  %v1419_v37 = vpop.f32.mrb[8].mxu1 }
 0x30c   : > { %v1263_v38 = vpack.c.bf16 %v1419_v37, %v1419_v37  ;;  %v975_v39 = vpop.f32.mrb[9].mxu1 }
 0x30d   : > { %v1262_v40 = vpack.c.bf16 %v975_v39, %v975_v39 }
 0x30e   : > { %1080 = vst.msk [vmem:[%s1822_s30 + $0x2c] sm:$0xf] %vm1068_vm3, %v1263_v38 }
 0x30f   : > { %1079 = vst.msk [vmem:[%s1822_s30 + $0x28] sm:$0xf] %vm1068_vm3, %v1262_v40  ;;  %v1422_v41 = vpop.f32.mrb[10].mxu1 }
 0x310   : > { %v1265_v42 = vpack.c.bf16 %v1422_v41, %v1422_v41  ;;  %v985_v43 = vpop.f32.mrb[11].mxu1 }
 0x311   : > { %v1264_v44 = vpack.c.bf16 %v985_v43, %v985_v43 }
 0x312   : > { %1082 = vst.msk [vmem:[%s1822_s30 + $0x34] sm:$0xf] %vm1068_vm3, %v1265_v42 }
 0x313   : > { %1081 = vst.msk [vmem:[%s1822_s30 + $0x30] sm:$0xf] %vm1068_vm3, %v1264_v44  ;;  %v1425_v45 = vpop.f32.mrb[12].mxu1 }
 0x314   : > { %v1267_v46 = vpack.c.bf16 %v1425_v45, %v1425_v45  ;;  %v995_v47 = vpop.f32.mrb[13].mxu1 }
 0x315   : > { %v1266_v48 = vpack.c.bf16 %v995_v47, %v995_v47 }
 0x316   : > { %1084 = vst.msk [vmem:[%s1822_s30 + $0x3c] sm:$0xf] %vm1068_vm3, %v1267_v46 }
 0x317   : > { %1083 = vst.msk [vmem:[%s1822_s30 + $0x38] sm:$0xf] %vm1068_vm3, %v1266_v48 }
 0x318 PF: > { %s18_s25 = sadd.s32 1, %s1657_s25   ;;  %s2013_s14 = sld [smem:[#allocation6_spill]] }
 0x319   : > { %p15_p6 = scmp.ge.s32.totalorder %s18_s25, 6   ;;  %s2014_s18 = smov %s1633_s19 }
 0x31a   : > { %s2015_s19 = smov %s1637_s20  ;;  %s2016_s20 = smov %s1761_s13 }
 0x31b   : > { %s2017_s21 = smov %s1649_s23  ;;  %s2018_s22 = smov %s1653_s24 }
 0x31c   : > { %s2020_s24 = smov %s2026_s28  ;;  %17 = sbr.rel (!%p15_p6) target bundleno = 5 (0x5), region = 89 }
 0x31e   : > { %s2019_s23 = smov %s2013_s14 }
 0x323   :  { %1107 = vsyncpa [#allocation4], 1 }
 0x324   :  { %1109 = vsyncpa [#allocation4 + $0x1], 1 }

</bundles_post_ra>
